<compile_context>
chip_gen: v5e
topology: v5e:2x2
jax: 0.10.0
libtpu: 0.0.40
codegen_flags: <defaults>
</compile_context>

<pallas_src>
import functools

import numpy as np
import jax
import jax.numpy as jnp
from jax.experimental import pallas as pl
from jax.experimental.pallas import tpu as pltpu

IN1, H1, H2, OUT = 11, 6, 3, 1
_TB_MAX = 32768   # max lanes per grid step: x block = 11*32768*4 B ~ 1.4 MiB (x2 buffers)


def _round_up(v, m):
    return ((v + m - 1) // m) * m


def mlp_kernel(w1_ref, b1_ref, w2_ref, b2_ref, w3_ref, b3_ref, x_ref, o_ref):
    # x_ref: f32[11, TB]  (batch on the lane axis)
    # o_ref: f32[1,  TB]  (lane-dense output)
    x = x_ref[...]

    dot = functools.partial(
        jnp.dot,
        preferred_element_type=jnp.float32,
        precision=jax.lax.Precision.HIGHEST,   # f32-accurate MXU passes (keeps 1e-5 atol)
    )

    # Layer 1: Linear(11 -> 6) + ReLU.  Dropout(p=0.15) is identity at inference.
    # TODO(synk): training-mode dropout would use pltpu.prng_seed / prng_random_bits.
    h1 = jnp.maximum(dot(w1_ref[...], x) + b1_ref[...], 0.0)     # (6, TB)

    # Layer 2: Linear(6 -> 3) + ReLU
    h2 = jnp.maximum(dot(w2_ref[...], h1) + b2_ref[...], 0.0)    # (3, TB)

    # Layer 3: Linear(3 -> 1) + sigmoid (sigmoid uses the EUP slot: ~free)
    z = dot(w3_ref[...], h2) + b3_ref[...]                       # (1, TB)
    o_ref[...] = jax.nn.sigmoid(z).astype(o_ref.dtype)


@jax.jit
def mlp_forward(x, w1, b1, w2, b2, w3, b3):
    """x: [B, 11] f32; weights in PyTorch layout (w[out, in], b[out]). Returns [B, 1]."""
    B = x.shape[0]

    # Large lane-dense batch tiles; keep >=2 grid steps when B allows (v7x megacore).
    tb = min(_TB_MAX, max(128, _round_up(pl.cdiv(B, 2), 128)))
    nb = pl.cdiv(B, tb)
    B_pad = nb * tb

    # Batch onto the lane axis; zero-pad tail columns (sliced off below).
    # TODO(synk): ideally x stays feature-major upstream so this pad+transpose
    # (one fused XLA op under jit) drops out of the HBM budget entirely.
    xt = jnp.zeros((IN1, B_pad), jnp.float32).at[:, :B].set(x.T.astype(jnp.float32))

    w1c = w1.astype(jnp.float32)
    w2c = w2.astype(jnp.float32)
    w3c = w3.astype(jnp.float32)
    b1c = b1.reshape(H1, 1).astype(jnp.float32)
    b2c = b2.reshape(H2, 1).astype(jnp.float32)
    b3c = b3.reshape(OUT, 1).astype(jnp.float32)

    def full(shape):
        # Full-extent block, constant across the grid -> fetched once.
        return pl.BlockSpec(shape, lambda i: (0, 0))

    out_t = pl.pallas_call(
        mlp_kernel,
        out_shape=jax.ShapeDtypeStruct((OUT, B_pad), jnp.float32),
        grid=(nb,),
        in_specs=[
            full((H1, IN1)), full((H1, 1)),      # w1, b1
            full((H2, H1)),  full((H2, 1)),      # w2, b2
            full((OUT, H2)), full((OUT, 1)),     # w3, b3
            pl.BlockSpec((IN1, tb), lambda i: (0, i)),   # x tile: [11, tb]
        ],
        out_specs=pl.BlockSpec((OUT, tb), lambda i: (0, i)),  # lane-dense out tile
        compiler_params=pltpu.CompilerParams(
            dimension_semantics=("parallel",),     # megacore split on v7x; no-op v5e/v6e
            vmem_limit_bytes=32 * 1024 * 1024,     # safe on v7x's 64 MiB physical VMEM
        ),
    )(w1c, b1c, w2c, b2c, w3c, b3c, xt)

    return out_t[:, :B].T   # back to [B, 1]


def init_params(key):
    # Deterministic init mimicking nn.Linear's uniform(-1/sqrt(fan_in), +), PyTorch layout.
    def linear(k, fan_in, fan_out):
        kw, kb = jax.random.split(k)
        bound = 1.0 / jnp.sqrt(jnp.float32(fan_in))
        w = jax.random.uniform(kw, (fan_out, fan_in), jnp.float32, -bound, bound)
        b = jax.random.uniform(kb, (fan_out,), jnp.float32, -bound, bound)
        return w, b

    k1, k2, k3 = jax.random.split(key, 3)
    w1, b1 = linear(k1, IN1, H1)
    w2, b2 = linear(k2, H1, H2)
    w3, b3 = linear(k3, H2, OUT)
    return w1, b1, w2, b2, w3, b3


if __name__ == "__main__":
    key = jax.random.PRNGKey(0)
    kx, kp = jax.random.split(key)

    B = 200  # exercises a 2-step grid (tb=128) and the zero-padded tail columns
    x = jax.random.normal(kx, (B, IN1), jnp.float32)
    w1, b1, w2, b2, w3, b3 = init_params(kp)

    out = jax.block_until_ready(mlp_forward(x, w1, b1, w2, b2, w3, b3))

    # Full-f32 reference on host (avoids TPU default matmul precision in the check).
    xn = np.asarray(x)
    w1n, b1n = np.asarray(w1), np.asarray(b1)
    w2n, b2n = np.asarray(w2), np.asarray(b2)
    w3n, b3n = np.asarray(w3), np.asarray(b3)
    h1 = np.maximum(xn @ w1n.T + b1n, 0.0)
    h2 = np.maximum(h1 @ w2n.T + b2n, 0.0)
    zr = h2 @ w3n.T + b3n
    ref = 1.0 / (1.0 + np.exp(-zr))

    assert out.shape == (B, 1)
    assert np.allclose(np.asarray(out), ref, atol=1e-5, rtol=1e-5), "mismatch vs reference"

    print("KERNEL_OK")
</pallas_src>

<mosaic_0001>
module attributes {stable_mosaic.version = 11 : i64} {
  func.func @mlp_kernel(%arg0: i32, %arg1: memref<6x11xf32, #tpu.memory_space<vmem>>, %arg2: memref<6x1xf32, #tpu.memory_space<vmem>>, %arg3: memref<3x6xf32, #tpu.memory_space<vmem>>, %arg4: memref<3x1xf32, #tpu.memory_space<vmem>>, %arg5: memref<1x3xf32, #tpu.memory_space<vmem>>, %arg6: memref<1x1xf32, #tpu.memory_space<vmem>>, %arg7: memref<11x128xf32, #tpu.memory_space<vmem>>, %arg8: memref<1x128xf32, #tpu.memory_space<vmem>>) attributes {dimension_semantics = [#tpu.dimension_semantics<parallel>], iteration_bounds = array<i64: 2>, scalar_prefetch = 0 : i64, scratch_operands = 0 : i64, tpu.core_type = #tpu.core_type<tc>, window_params = [{pipeline_mode = #tpu.pipeline_mode<synchronous>, transform_indices = @transform_0, window_bounds = array<i64: 6, 11>}, {pipeline_mode = #tpu.pipeline_mode<synchronous>, transform_indices = @transform_1, window_bounds = array<i64: 6, 1>}, {pipeline_mode = #tpu.pipeline_mode<synchronous>, transform_indices = @transform_2, window_bounds = array<i64: 3, 6>}, {pipeline_mode = #tpu.pipeline_mode<synchronous>, transform_indices = @transform_3, window_bounds = array<i64: 3, 1>}, {pipeline_mode = #tpu.pipeline_mode<synchronous>, transform_indices = @transform_4, window_bounds = array<i64: 1, 3>}, {pipeline_mode = #tpu.pipeline_mode<synchronous>, transform_indices = @transform_5, window_bounds = array<i64: 1, 1>}, {transform_indices = @transform_6, window_bounds = array<i64: 11, 128>}, {transform_indices = @transform_7, window_bounds = array<i64: 1, 128>}]} {
    %c0 = arith.constant 0 : index
    %c0_0 = arith.constant 0 : index
    %0 = vector.load %arg7[%c0, %c0_0] : memref<11x128xf32, #tpu.memory_space<vmem>>, vector<11x128xf32>
    %c0_1 = arith.constant 0 : index
    %c0_2 = arith.constant 0 : index
    %1 = vector.load %arg1[%c0_1, %c0_2] : memref<6x11xf32, #tpu.memory_space<vmem>>, vector<6x11xf32>
    %cst = arith.constant dense<0.000000e+00> : vector<6x128xf32>
    %2 = tpu.matmul %1, %0, %cst {dimension_numbers = #tpu.dot_dimension_numbers<[1], [0], [0], [1], [0, 0, 1, 1], [], []>, precision = #tpu.contract_precision<fp32>} : vector<6x11xf32>, vector<11x128xf32>, vector<6x128xf32> -> vector<6x128xf32>
    %c0_3 = arith.constant 0 : index
    %c0_4 = arith.constant 0 : index
    %3 = vector.load %arg2[%c0_3, %c0_4] : memref<6x1xf32, #tpu.memory_space<vmem>>, vector<6x1xf32>
    %4 = vector.broadcast %3 : vector<6x1xf32> to vector<6x128xf32>
    %5 = arith.addf %2, %4 : vector<6x128xf32>
    %cst_5 = arith.constant 0.000000e+00 : f32
    %6 = vector.broadcast %cst_5 : f32 to vector<6x128xf32>
    %7 = arith.maximumf %5, %6 : vector<6x128xf32>
    %c0_6 = arith.constant 0 : index
    %c0_7 = arith.constant 0 : index
    %8 = vector.load %arg3[%c0_6, %c0_7] : memref<3x6xf32, #tpu.memory_space<vmem>>, vector<3x6xf32>
    %cst_8 = arith.constant dense<0.000000e+00> : vector<3x128xf32>
    %9 = tpu.matmul %8, %7, %cst_8 {dimension_numbers = #tpu.dot_dimension_numbers<[1], [0], [0], [1], [0, 0, 1, 1], [], []>, precision = #tpu.contract_precision<fp32>} : vector<3x6xf32>, vector<6x128xf32>, vector<3x128xf32> -> vector<3x128xf32>
    %c0_9 = arith.constant 0 : index
    %c0_10 = arith.constant 0 : index
    %10 = vector.load %arg4[%c0_9, %c0_10] : memref<3x1xf32, #tpu.memory_space<vmem>>, vector<3x1xf32>
    %11 = vector.broadcast %10 : vector<3x1xf32> to vector<3x128xf32>
    %12 = arith.addf %9, %11 : vector<3x128xf32>
    %cst_11 = arith.constant 0.000000e+00 : f32
    %13 = vector.broadcast %cst_11 : f32 to vector<3x128xf32>
    %14 = arith.maximumf %12, %13 : vector<3x128xf32>
    %c0_12 = arith.constant 0 : index
    %c0_13 = arith.constant 0 : index
    %15 = vector.load %arg5[%c0_12, %c0_13] : memref<1x3xf32, #tpu.memory_space<vmem>>, vector<1x3xf32>
    %cst_14 = arith.constant dense<0.000000e+00> : vector<1x128xf32>
    %16 = tpu.matmul %15, %14, %cst_14 {dimension_numbers = #tpu.dot_dimension_numbers<[1], [0], [0], [1], [0, 0, 1, 1], [], []>, precision = #tpu.contract_precision<fp32>} : vector<1x3xf32>, vector<3x128xf32>, vector<1x128xf32> -> vector<1x128xf32>
    %c0_15 = arith.constant 0 : index
    %c0_16 = arith.constant 0 : index
    %17 = vector.load %arg6[%c0_15, %c0_16] : memref<1x1xf32, #tpu.memory_space<vmem>>, vector<1x1xf32>
    %18 = vector.broadcast %17 : vector<1x1xf32> to vector<1x128xf32>
    %19 = arith.addf %16, %18 : vector<1x128xf32>
    %20 = arith.negf %19 : vector<1x128xf32>
    %21 = math.exp %20 : vector<1x128xf32>
    %cst_17 = arith.constant 1.000000e+00 : f32
    %22 = vector.broadcast %cst_17 : f32 to vector<1x128xf32>
    %23 = arith.addf %22, %21 : vector<1x128xf32>
    %24 = arith.divf %22, %23 : vector<1x128xf32>
    %c0_18 = arith.constant 0 : index
    %c0_19 = arith.constant 0 : index
    %25 = vector.load %arg8[%c0_18, %c0_19] : memref<1x128xf32, #tpu.memory_space<vmem>>, vector<1x128xf32>
    tpu.vector_store %arg8[%c0_18, %c0_19], %24 {strides = array<i32>} : memref<1x128xf32, #tpu.memory_space<vmem>>, vector<1x128xf32>,
    return
  }
  func.func @transform_0(%arg0: i32) -> (i32, i32) {
    %c0_i32 = arith.constant 0 : i32
    %c0_i32_0 = arith.constant 0 : i32
    %c0_i32_1 = arith.constant 0 : i32
    return %c0_i32, %c0_i32_0 : i32, i32
  }
  func.func @transform_1(%arg0: i32) -> (i32, i32) {
    %c0_i32 = arith.constant 0 : i32
    %c0_i32_0 = arith.constant 0 : i32
    %c0_i32_1 = arith.constant 0 : i32
    return %c0_i32, %c0_i32_0 : i32, i32
  }
  func.func @transform_2(%arg0: i32) -> (i32, i32) {
    %c0_i32 = arith.constant 0 : i32
    %c0_i32_0 = arith.constant 0 : i32
    %c0_i32_1 = arith.constant 0 : i32
    return %c0_i32, %c0_i32_0 : i32, i32
  }
  func.func @transform_3(%arg0: i32) -> (i32, i32) {
    %c0_i32 = arith.constant 0 : i32
    %c0_i32_0 = arith.constant 0 : i32
    %c0_i32_1 = arith.constant 0 : i32
    return %c0_i32, %c0_i32_0 : i32, i32
  }
  func.func @transform_4(%arg0: i32) -> (i32, i32) {
    %c0_i32 = arith.constant 0 : i32
    %c0_i32_0 = arith.constant 0 : i32
    %c0_i32_1 = arith.constant 0 : i32
    return %c0_i32, %c0_i32_0 : i32, i32
  }
  func.func @transform_5(%arg0: i32) -> (i32, i32) {
    %c0_i32 = arith.constant 0 : i32
    %c0_i32_0 = arith.constant 0 : i32
    %c0_i32_1 = arith.constant 0 : i32
    return %c0_i32, %c0_i32_0 : i32, i32
  }
  func.func @transform_6(%arg0: i32) -> (i32, i32) {
    %c0_i32 = arith.constant 0 : i32
    %c0_i32_0 = arith.constant 0 : i32
    return %c0_i32, %arg0 : i32, i32
  }
  func.func @transform_7(%arg0: i32) -> (i32, i32) {
    %c0_i32 = arith.constant 0 : i32
    %c0_i32_0 = arith.constant 0 : i32
    return %c0_i32, %arg0 : i32, i32
  }
}

</mosaic_0001>

<bundles_post_ra>
// kernel: mlp_forward.1
= control target key start
LH: loop header
LB: loop body
LE: loop exit
PB: predicated region body
PF: predicated region fallthrough
CT: control target
= control target key end

     0   :  { %s1070_s0 = inlined_call_operand.vmem [shape: f32[6,11], index: 0, kind: input, shape index: {}]   ;;  %s1071_s1 = inlined_call_operand.vmem [shape: f32[6,1], index: 1, kind: input, shape index: {}]   ;;  %s1072_s2 = inlined_call_operand.vmem [shape: f32[3,6], index: 2, kind: input, shape index: {}]   ;;  %s1073_s3 = inlined_call_operand.vmem [shape: f32[3,1], index: 3, kind: input, shape index: {}]   ;;  %s1074_s4 = inlined_call_operand.vmem [shape: f32[1,3], index: 4, kind: input, shape index: {}]   ;;  %s1075_s5 = inlined_call_operand.<no memory space> [shape: f32[1,1], index: 5, kind: input, shape index: {}]   ;;  %s1076_s6 = inlined_call_operand.vmem [shape: f32[11,256], index: 6, kind: input, shape index: {}]   ;;  %s1077_s7 = inlined_call_operand.vmem [shape: f32[1,256], index: 7, kind: output, shape index: {}]  }
   0x1   :  { %v12_v0 = vstv %s1075_s5 }
   0x2   :  { %13 = vst [vmem:[#allocation2] sm:$0x1] %v12_v0 }
   0x3   :  { %s999_s26 = smov 0   ;;  %s1001_s27 = smov 0  }
   0x4   :  { %s1003_s28 = smov 0  }
   0x5 LB: > { %s889_s5 = sadd.s32 4294967295, %s953_s28   ;;  %s1016_s29 = sadd.s32 1, %s953_s28   ;;  %s953_s28 = sphi %s1003_s28, %s1080_s28   ;;  %s949_s27 = sphi %s1001_s27, %s1079_s27   ;;  %s945_s26 = sphi %s999_s26, %s1078_s26  }
   0x6   : > { %s149_s30 = ssub.s32 %s953_s28, %s1016_s29  ;;  %s152_s8 = sadd.s32 1, %s949_s27 }
   0x7   : > { %p150_p0 = scmp.eq.s32.totalorder %s149_s30, 0  ;;  %p159_p1 = scmp.ne.s32.totalorder %s949_s27, %s945_s26 }
   0x8   : > { %p160_p2 = scmp.eq.s32.totalorder %s953_s28, 0  ;;  %p892_p4 = scmp.ge.s32.totalorder %s953_s28, 2 }
   0x9   : > { %s1025_s9 = scalar_select %p150_p0, %s949_s27, %s152_s8  }
   0xa   : > { %p161_p3 = por %p160_p2, %p159_p1  ;;  %229 = sbr.rel (%p892_p4) target bundleno = 21 (0x15), region = 40 }
   0xf   : > { %232 = sbr.rel (!%p161_p3) target bundleno = 21 (0x15), region = 44  ;;  %s234_s10 = sand.u32 (%p161_p3), 1, %s949_s27  }
  0x10   : > { %s894_s11 = sshll.u32 (%p161_p3), %s953_s28, 3  ;;  %s893_s12 = sshll.u32 (%p161_p3), %s234_s10, 4 }
  0x11   : > { %s238_s15 = scalar_lea.vmem (%p161_p3), %s1076_s6, %s894_s11  ;;  %s236_s16 = scalar_lea.vmem (%p161_p3), [#allocation3], %s893_s12 }
  0x12   : > { %v269_v1 = vld [vmem:[%s238_s15] sm:$0xff] (%p161_p3)  ;;  %v271_v2 = vld [vmem:[%s238_s15 + $0x10] sm:$0xff] (%p161_p3) }
  0x13   : > { %270 = vst [vmem:[%s236_s16] sm:$0xff] (%p161_p3), %v269_v1 }
  0x14   : > { %272 = vst [vmem:[%s236_s16 + $0x8] sm:$0xff] %v271_v2 }
  0x15 PF: > { %p895_p5 = scmp.ge.s32.totalorder %s953_s28, 1  ;;  %p277_p6 = scmp.lt.s32.totalorder %s953_s28, 3 }
  0x17   : > { %p278_p7 = pnand %p895_p5, %p277_p6 }
  0x18   : > { %s284_s17 = sand.u32 (!%p278_p7), 1, %s945_s26   ;;  %p313_p8 = scmp.lt.s32.totalorder (!%p278_p7), %s889_s5, 1 }
  0x19   : > { %281 = sbr.rel (%p278_p7) target bundleno = 517 (0x205), region = 82  ;;  %s896_s20 = sshll.u32 (!%p278_p7), %s284_s17, 4 }
  0x1a   : > { %s286_s23 = scalar_lea.vmem (!%p278_p7), [#allocation3], %s896_s20 }
  0x1e   : > { %v318_v3 = vld [vmem:[%s1070_s0] sm:$0x3f]  ;;  %vm325_vm0 = vcmask 89088   ;;  %vm329_vm1 = vcmask 1042432   ;;  %v955_v5 = vmov 0   ;;  %vm500_vm2 = vcmask 48128  }
  0x1f   : > { %v327_v4 = vsel %vm325_vm0, %v318_v3, 0  ;;  %925 = vset.pattern.permute.xlu0 %v955_v5  ;;  %v319_v6 = vld [vmem:[%s1071_s1] sm:$0x3f]  ;;  %926 = vset.pattern.permute.xlu1 %v955_v5  ;;  %v317_v8 = vld [vmem:[%s286_s23 + $0x8] sm:$0x7]  ;;  %vm504_vm3 = vcmask 1045504  }
  0x20   : > { %v351_v7 = vand.u32 4294901760, %v327_v4  ;;  %322 = vperm.xlu0 %925, %v319_v6   ;;  %v316_v9 = vld [vmem:[%s286_s23] sm:$0xff]  ;;  %v331_v10 = vsel %vm329_vm1, %v317_v8, 0  ;;  %v655_v53 = vld [vmem:[%s1074_s4] sm:$0x1]  ;;  %vm663_vm4 = vcmask 23552  }
  0x21   : > { %v349_v11 = vand.u32 4294901760, %v316_v9  ;;  %v347_v13 = vand.u32 4294901760, %v331_v10  ;;  %v494_v17 = vld [vmem:[%s1073_s3] sm:$0x7]  ;;  %v665_v54 = vsel %vm663_vm4, %v655_v53, 0  ;;  %s1082_s5 = smov (!%p313_p8, %s889_s5), 1 }
  0x22   : > { %v352_v12 = vsub.f32 %v327_v4, %v351_v7  ;;  %v493_v26 = vld [vmem:[%s1072_s2] sm:$0x7]  ;;  %v687_v57 = vand.u32 4294901760, %v665_v54  ;;  %s315_s13 = scalar_lea.vmem %s1077_s7, %s1082_s5 }
  0x23   : > { %v381_v14 = vsub.f32 %v316_v9, %v349_v11  ;;  %v375_v16 = vsub.f32 %v331_v10, %v347_v13  ;;  %348 = vmatpush.msra.mxu0 %v347_v13  ;;  %432 = vmatpush.msra.mxu3 %v347_v13  ;;  %v502_v28 = vsel %vm500_vm2, %v493_v26, 0  ;;  %v656_v55 = vld [vmem:[#allocation2] sm:$0x1] }
  0x24   : > { %v353_v15 = vand.u32 4294901760, %v352_v12  ;;  %v525_v31 = vand.u32 4294901760, %v502_v28  ;;  %659 = vperm.xlu1 %926, %v656_v55   ;;  %v688_v63 = vsub.f32 %v665_v54, %v687_v57 }
  0x25   : > { %v382_v19 = vand.u32 4294901760, %v381_v14  ;;  %407 = vmatpush.msra.mxu2 %v375_v16  ;;  %350 = vmatpush.msra.mxu0 %v349_v11  ;;  %v376_v20 = vand.u32 4294901760, %v375_v16 }
  0x26   : > { %v354_v18 = vsub.f32 %v352_v12, %v353_v15  ;;  %434 = vmatpush.msra.mxu3 %v349_v11  ;;  %v526_v35 = vsub.f32 %v502_v28, %v525_v31  ;;  %v689_v4 = vand.u32 4294901760, %v688_v63 }
  0x27   : > { %v383_v22 = vsub.f32 %v381_v14, %v382_v19  ;;  %410 = vmatpush.msra.mxu2 %v381_v14  ;;  %v377_v23 = vsub.f32 %v375_v16, %v376_v20  ;;  %438 = vmatmul.f32.vlgmr.msra.gmra.mxu3 %v353_v15 }
  0x28   : > { %v355_v21 = vand.u32 4294901760, %v354_v18  ;;  %497 = vperm.xlu0 %925, %v494_v17   ;;  %413 = vmatmul.f32.vlgmr.msra.gmra.mxu2 %v352_v12  ;;  %v527_v40 = vand.u32 4294901760, %v526_v35  ;;  %v690_v8 = vsub.f32 %v688_v63, %v689_v4 }
  0x29   : > { %v378_v24 = vand.u32 4294901760, %v377_v23  ;;  %v384_v25 = vand.u32 4294901760, %v383_v22  ;;  %459 = vmatpush.msrb.mxu0 %v376_v20 }
  0x2a   : > { %356 = vmatmul.f32.vlgmr.msra.gmra.mxu0 %v355_v21  ;;  %v528_v44 = vsub.f32 %v526_v35, %v527_v40 }
  0x2b   : > { %379 = vmatpush.msra.mxu1 %v378_v24  ;;  %463 = vmatpush.msrb.mxu0 %v382_v19 }
  0x2c   : > { %v529_v47 = vand.u32 4294901760, %v528_v44 }
  0x2d   : > { %385 = vmatpush.msra.mxu1 %v384_v25 }
  0x2e   : > { %387 = vmatmul.f32.vlgmr.msra.gmra.mxu1 %v351_v7 }
  0x2f   : > { %484 = vmatpush.msrb.mxu1 %v347_v13 }
  0x31   : > { %486 = vmatpush.msrb.mxu1 %v349_v11  ;;  %v691_v11 = vand.u32 4294901760, %v690_v8 }
  0x32   : > { %465 = vmatmul.f32.vlgmr.msrb.gmra.mxu0 %v351_v7 }
  0x36   : > { %488 = vmatmul.f32.vlgmr.msrb.gmra.mxu1 %v351_v7 }
  0x92   : > { %v323_v29 = vpop.permute.xlu0 %322 }
  0x96   : > { %v660_v17 = vpop.permute.xlu1 %659 }
  0x97   : > { %v662_v18 = vperm.slane %v660_v17, 0 }
  0x9a   : > { %v498_v58 = vpop.permute.xlu0 %497 }
  0xa7   : > { %v357_v27 = vpop.f32.mrf.mxu0 }
  0xa8   : > { %v358_v30 = vadd.f32 %v357_v27, %v323_v29 }
  0xaa   : > { %v439_v36 = vpop.f32.mrf.mxu3 }
  0xab   : > { %v388_v32 = vpop.f32.mrf.mxu1  ;;  %v414_v33 = vpop.f32.mrf.mxu2 }
  0xac   : > { %v389_v34 = vadd.f32 %v388_v32, %v358_v30 }
  0xae   : > { %v415_v37 = vadd.f32 %v414_v33, %v389_v34 }
  0xaf   : > { %v466_v38 = vpop.f32.mrf.mxu0 }
  0xb0   : > { %v440_v39 = vadd.f32 %v439_v36, %v415_v37 }
  0xb2   : > { %v467_v41 = vadd.f32 %v466_v38, %v440_v39 }
  0xb3   : > { %v489_v42 = vpop.f32.mrf.mxu1 }
  0xb4   : > { %v490_v43 = vadd.f32 %v489_v42, %v467_v41 }
  0xb6   : > { %v492_v45 = vmax.f32 %v490_v43, 0.0 }
  0xb8   : > { %v506_v46 = vsel %vm504_vm3, %v492_v45, 0 }
  0xb9   : > { %v523_v48 = vand.u32 4294901760, %v506_v46 }
  0xbb   : > { %v550_v49 = vsub.f32 %v506_v46, %v523_v48  ;;  %524 = vmatpush.msrb.mxu2 %v523_v48  ;;  %600 = vmatpush.msra.mxu1 %v523_v48 }
  0xbc   : > { %530 = vmatmul.f32.vlgmr.msrb.gmra.mxu2 %v529_v47  ;;  %604 = vmatmul.f32.vlgmr.msra.gmra.mxu1 %v527_v40 }
  0xbd   : > { %577 = vmatpush.msra.mxu0 %v550_v49  ;;  %v551_v50 = vand.u32 4294901760, %v550_v49 }
  0xbe   : > { %580 = vmatmul.f32.vlgmr.msra.gmra.mxu0 %v526_v35 }
  0xbf   : > { %626 = vmatpush.msra.mxu2 %v551_v50  ;;  %v552_v51 = vsub.f32 %v550_v49, %v551_v50 }
  0xc1   : > { %v553_v52 = vand.u32 4294901760, %v552_v51 }
  0xc3   : > { %554 = vmatpush.msrb.mxu3 %v553_v52 }
  0xc4   : > { %556 = vmatmul.f32.vlgmr.msrb.gmra.mxu3 %v525_v31  ;;  %628 = vmatmul.f32.vlgmr.msra.gmra.mxu2 %v525_v31 }
  0xc5   : > { %648 = vmatpush.msra.mxu3 %v523_v48 }
  0xcc   : > { %650 = vmatmul.f32.vlgmr.msra.gmra.mxu3 %v525_v31 }
 0x139   : > { %v605_v0 = vpop.f32.mrf.mxu1 }
 0x13b   : > { %v581_v61 = vpop.f32.mrf.mxu0 }
 0x13f   : > { %v531_v56 = vpop.f32.mrf.mxu2 }
 0x140   : > { %v532_v59 = vadd.f32 %v531_v56, %v498_v58 }
 0x147   : > { %v557_v60 = vpop.f32.mrf.mxu3  ;;  %v629_v2 = vpop.f32.mrf.mxu2 }
 0x148   : > { %v558_v62 = vadd.f32 %v557_v60, %v532_v59 }
 0x14a   : > { %v582_v1 = vadd.f32 %v581_v61, %v558_v62 }
 0x14c   : > { %v606_v3 = vadd.f32 %v605_v0, %v582_v1 }
 0x14e   : > { %v630_v5 = vadd.f32 %v629_v2, %v606_v3 }
 0x14f   : > { %v651_v6 = vpop.f32.mrf.mxu3 }
 0x150   : > { %v652_v7 = vadd.f32 %v651_v6, %v630_v5 }
 0x152   : > { %v654_v9 = vmax.f32 %v652_v7, 0.0 }
 0x154   : > { %v668_v10 = vsel %vm329_vm1, %v654_v9, 0 }
 0x155   : > { %v685_v12 = vand.u32 4294901760, %v668_v10 }
 0x157   : > { %v712_v13 = vsub.f32 %v668_v10, %v685_v12  ;;  %686 = vmatpush.msrb.mxu0 %v685_v12  ;;  %762 = vmatpush.msrb.mxu3 %v685_v12 }
 0x158   : > { %692 = vmatmul.f32.vlgmr.msrb.gmra.mxu0 %v691_v11  ;;  %766 = vmatmul.f32.vlgmr.msrb.gmra.mxu3 %v689_v4 }
 0x159   : > { %739 = vmatpush.msrb.mxu2 %v712_v13  ;;  %v713_v14 = vand.u32 4294901760, %v712_v13 }
 0x15a   : > { %742 = vmatmul.f32.vlgmr.msrb.gmra.mxu2 %v688_v63 }
 0x15b   : > { %788 = vmatpush.msra.mxu0 %v713_v14  ;;  %v714_v15 = vsub.f32 %v712_v13, %v713_v14 }
 0x15d   : > { %v715_v16 = vand.u32 4294901760, %v714_v15 }
 0x15f   : > { %716 = vmatpush.msrb.mxu1 %v715_v16 }
 0x160   : > { %718 = vmatmul.f32.vlgmr.msrb.gmra.mxu1 %v687_v57  ;;  %790 = vmatmul.f32.vlgmr.msra.gmra.mxu0 %v687_v57 }
 0x161   : > { %810 = vmatpush.msra.mxu1 %v685_v12 }
 0x168   : > { %812 = vmatmul.f32.vlgmr.msra.gmra.mxu1 %v687_v57 }
 0x1d5   : > { %v693_v19 = vpop.f32.mrf.mxu0 }
 0x1d6   : > { %v694_v20 = vadd.f32 %v693_v19, %v662_v18 }
 0x1db   : > { %v767_v24 = vpop.f32.mrf.mxu3 }
 0x1dd   : > { %v719_v21 = vpop.f32.mrf.mxu1  ;;  %v743_v22 = vpop.f32.mrf.mxu2 }
 0x1de   : > { %v720_v23 = vadd.f32 %v719_v21, %v694_v20  ;;  %v791_v26 = vpop.f32.mrf.mxu0 }
 0x1e0   : > { %v744_v25 = vadd.f32 %v743_v22, %v720_v23 }
 0x1e2   : > { %v768_v27 = vadd.f32 %v767_v24, %v744_v25 }
 0x1e4   : > { %v792_v28 = vadd.f32 %v791_v26, %v768_v27 }
 0x1e5   : > { %v813_v29 = vpop.f32.mrf.mxu1 }
 0x1e6   : > { %v814_v30 = vadd.f32 %v813_v29, %v792_v28 }
 0x1e8   : > { %v897_v31 = vmul.f32 -1.442695, %v814_v30 }
 0x1ea   : > { %927 = vpow2.f32 %v897_v31 }
 0x1f0   : > { %v928_v32 = vpop.eup %927 }
 0x1f1   : > { %v819_v33 = vadd.f32 1.0, %v928_v32 }
 0x1f3   : > { %929 = vrcp.f32 %v819_v33  ;;  %v831_v37 = vand.u32 2147483648, %v819_v33  ;;  %v829_v39 = vand.u32 2147483647, %v819_v33  ;;  %vm825_vm6 = vweird.f32 %v819_v33 }
 0x1f5   : > { %v832_v41 = vor.u32 1.1754944e-38, %v831_v37  ;;  %vm830_vm8 = vcmp.eq.f32.partialorder %v829_v39, 8.507059e+37 }
 0x1f9   : > { %v930_v34 = vpop.eup %929 }
 0x1fa   : > { %v821_v35 = vmul.f32 %v930_v34, %v819_v33  ;;  %vm826_vm5 = vweird.f32 %v930_v34 }
 0x1fb   : > { %vm827_vm7 = vmor %vm825_vm6, %vm826_vm5 }
 0x1fc   : > { %v822_v36 = vsub.f32 1.0, %v821_v35 }
 0x1fe   : > { %v823_v38 = vmul.f32 %v930_v34, %v822_v36 }
 0x200   : > { %v824_v40 = vadd.f32 %v930_v34, %v823_v38 }
 0x202   : > { %v828_v42 = vsel %vm827_vm7, %v930_v34, %v824_v40 }
 0x203   : > { %v833_v43 = vsel %vm830_vm8, %v832_v41, %v828_v42 }
 0x204   : > { %835 = vst [vmem:[%s315_s13] sm:$0x1] %v833_v43 }
 0x205 PF: > { %p16_p9 = scmp.ge.s32.totalorder %s1016_s29, 4   ;;  %s1078_s26 = smov %s949_s27 }
 0x206   : > { %s1079_s27 = smov %s1025_s9  ;;  %s1080_s28 = smov %s1016_s29 }
 0x207   :  { %18 = sbr.rel (!%p16_p9) target bundleno = 5 (0x5), region = 121 }

</bundles_post_ra>
